<compile_context>
chip_gen: v7x
topology: tpu7x:2x2x1
jax: 0.10.0
libtpu: 0.0.40
codegen_flags: <defaults>
</compile_context>

<pallas_src>
import jax
import jax.numpy as jnp
from jax.experimental import pallas as pl
from jax.experimental.pallas import tpu as pltpu

LANE = 128


def _round_up(n, m):
    return ((n + m - 1) // m) * m


def _vmem_capacity_bytes():
    # Device-aware VMEM capacity (64 MiB/TC on v7x, 128 MiB on v5e/v6e).
    try:
        return int(pltpu.get_tpu_info().vmem_capacity_bytes)
    except Exception:  # capability query only; conservative fallback
        return 64 * 2**20


def _pipeline_mode_supported():
    # Static capability check (constructing a BlockSpec compiles nothing).
    if not hasattr(pl, "Buffered"):
        return False
    try:
        pl.BlockSpec((8, 128), lambda i: (0, 0), pipeline_mode=pl.Buffered(1))
        return True
    except TypeError:
        return False


_HAS_BUFFERED = _pipeline_mode_supported()


def mlp_kernel(x_ref, w1_ref, b1_ref, w2_ref, b2_ref, w3_ref, b3_ref, o_ref):
    # Three MXU matmuls with f32 accumulation; bias add / ReLU on the VPU in
    # f32 (v5e has no bf16 VPU), cast back to the compute dtype only to feed
    # the next matmul.
    cdt = w1_ref.dtype
    h1 = jnp.dot(x_ref[...], w1_ref[...],
                 preferred_element_type=jnp.float32) + b1_ref[...]
    h1 = jnp.maximum(h1, 0.0).astype(cdt)
    h2 = jnp.dot(h1, w2_ref[...],
                 preferred_element_type=jnp.float32) + b2_ref[...]
    h2 = jnp.maximum(h2, 0.0).astype(cdt)
    out = jnp.dot(h2, w3_ref[...],
                  preferred_element_type=jnp.float32) + b3_ref[...]
    o_ref[...] = out.astype(o_ref.dtype)


def prepare_params(params, compute_dtype=jnp.bfloat16, feature_align=LANE):
    """One-time parameter prep (call once, reuse across forwards).

    Weights are stored (in_features, out_features) — transpose of PyTorch
    nn.Linear storage — so the kernel computes x @ W + b. Only the hidden dim
    is zero-padded (exact: padded rows/cols contribute 0 to every dot); D_in
    and D_out stay at their true sizes and use full-extent blocks. Weights are
    cast to the compute dtype; biases stay f32 for the f32 epilogue.
    """
    cdt = jnp.dtype(compute_dtype)
    w1, w2, w3 = params["w1"], params["w2"], params["w3"]
    b1, b2, b3 = (params["b1"].reshape(1, -1), params["b2"].reshape(1, -1),
                  params["b3"].reshape(1, -1))
    d_in, h = w1.shape
    d_out = w3.shape[1]
    h_p = _round_up(h, feature_align)

    def pad2(a, r, c, dt):
        out = jnp.zeros((r, c), dt)
        return out.at[: a.shape[0], : a.shape[1]].set(a.astype(dt))

    return {
        "w1": pad2(w1, d_in, h_p, cdt),        # (D_in, H_p)
        "b1": pad2(b1, 1, h_p, jnp.float32),   # (1, H_p)
        "w2": pad2(w2, h_p, h_p, cdt),         # (H_p, H_p)
        "b2": pad2(b2, 1, h_p, jnp.float32),   # (1, H_p)
        "w3": pad2(w3, h_p, d_out, cdt),       # (H_p, D_out)
        "b3": pad2(b3, 1, d_out, jnp.float32), # (1, D_out)
    }


def mlp_forward(x, prepped, *, batch_tile=None):
    """Fused MLP forward. x: (B, D_in) f32; prepped: output of prepare_params.

    Returns (B, D_out) float32 = relu(relu(x@w1+b1)@w2+b2)@w3 + b3.
    Intended to be called under jax.jit so the batch pad / final slice fuse.
    """
    B, D_in = x.shape
    cdt = jnp.dtype(prepped["w1"].dtype)
    H_p = prepped["w2"].shape[0]
    D_out = prepped["w3"].shape[1]
    assert prepped["w1"].shape[0] == D_in

    sublane = 8 if cdt.itemsize == 4 else 16
    vmem_cap = _vmem_capacity_bytes()
    budget = int(0.85 * vmem_cap)

    # Resident (grid-invariant) operands.
    w_buf = 1 if _HAS_BUFFERED else 2
    w_bytes = (D_in * H_p + H_p * H_p + H_p * D_out) * cdt.itemsize
    b_bytes = (2 * H_p + D_out) * 4
    resident = w_buf * (w_bytes + b_bytes)
    if resident > int(0.55 * vmem_cap):
        raise NotImplementedError(
            "hidden size too large for the full-weights-in-VMEM fused kernel "
            f"({resident} B resident vs {vmem_cap} B VMEM)")

    # Per batch-row VMEM: double-buffered x/out tiles + f32 intermediates
    # + compute-dtype casts feeding the next matmul.
    per_row = (2 * (D_in * cdt.itemsize + D_out * 4)
               + H_p * (2 * 4 + 2 * cdt.itemsize))
    max_tile = max(sublane, ((budget - resident) // per_row) // sublane * sublane)

    if batch_tile is None:
        target = 512 if cdt.itemsize == 4 else 1024
        if vmem_cap < 96 * 2**20:      # v7x: 64 MiB per TensorCore
            target //= 2
        batch_tile = min(target, _round_up(B, sublane), max_tile)
    batch_tile = max(sublane, _round_up(batch_tile, sublane))
    B_p = _round_up(B, batch_tile)
    n_steps = B_p // batch_tile

    # x: cast to compute dtype and pad the batch dim only (cheap, under jit).
    xp = x.astype(cdt)
    if B_p != B:
        xp = jnp.pad(xp, ((0, B_p - B), (0, 0)))

    flops = 2 * B_p * (D_in * H_p + H_p * H_p + H_p * D_out)
    bytes_accessed = (B_p * D_in * cdt.itemsize + w_bytes + b_bytes
                      + B_p * D_out * 4)
    cost = pl.CostEstimate(flops=flops, transcendentals=0,
                           bytes_accessed=bytes_accessed)

    # Grid-invariant weights/biases: single-buffered when the jax build
    # supports pipeline_mode (their block never changes across grid steps, so
    # double-buffering them only burns VMEM).
    const_kw = {"pipeline_mode": pl.Buffered(1)} if _HAS_BUFFERED else {}

    def const_spec(shape):
        return pl.BlockSpec(shape, lambda i: (0, 0), **const_kw)

    in_specs = [
        pl.BlockSpec((batch_tile, D_in), lambda i: (i, 0)),  # x tile
        const_spec((D_in, H_p)),
        const_spec((1, H_p)),
        const_spec((H_p, H_p)),
        const_spec((1, H_p)),
        const_spec((H_p, D_out)),
        const_spec((1, D_out)),
    ]
    out_spec = pl.BlockSpec((batch_tile, D_out), lambda i: (i, 0))

    out_p = pl.pallas_call(
        mlp_kernel,
        out_shape=jax.ShapeDtypeStruct((B_p, D_out), jnp.float32),
        grid_spec=pltpu.PrefetchScalarGridSpec(
            num_scalar_prefetch=0,
            grid=(n_steps,),
            in_specs=in_specs,
            out_specs=out_spec,
        ),
        compiler_params=pltpu.CompilerParams(
            dimension_semantics=("parallel",) if n_steps > 1 else ("arbitrary",),
            vmem_limit_bytes=budget,
        ),
        cost_estimate=cost,
    )(xp, prepped["w1"], prepped["b1"], prepped["w2"], prepped["b2"],
      prepped["w3"], prepped["b3"])

    return out_p[:B]


def init_params(key, input_dim, hidden_dim, output_dim):
    # Deterministic synthetic init (PyTorch-like uniform fan-in scaling).
    ks = jax.random.split(key, 6)

    def lin(kw, kb, fan_in, fan_out):
        bound = 1.0 / jnp.sqrt(jnp.float32(fan_in))
        w = jax.random.uniform(kw, (fan_in, fan_out), jnp.float32, -bound, bound)
        b = jax.random.uniform(kb, (1, fan_out), jnp.float32, -bound, bound)
        return w, b

    w1, b1 = lin(ks[0], ks[1], input_dim, hidden_dim)
    w2, b2 = lin(ks[2], ks[3], hidden_dim, hidden_dim)
    w3, b3 = lin(ks[4], ks[5], hidden_dim, output_dim)
    return {"w1": w1, "b1": b1, "w2": w2, "b2": b2, "w3": w3, "b3": b3}


def mlp_reference(x, p):
    h1 = jnp.maximum(x @ p["w1"] + p["b1"], 0.0)
    h2 = jnp.maximum(h1 @ p["w2"] + p["b2"], 0.0)
    return h2 @ p["w3"] + p["b3"]


if __name__ == "__main__":
    key = jax.random.PRNGKey(0)
    k_x, k_p, k_x2 = jax.random.split(key, 3)

    # Small shapes consistent with the module spec.
    B, INPUT_DIM, HIDDEN_DIM, OUTPUT_DIM = 8, 16, 32, 8
    x = jax.random.normal(k_x, (B, INPUT_DIM), jnp.float32)
    params = init_params(k_p, INPUT_DIM, HIDDEN_DIM, OUTPUT_DIM)

    fwd = jax.jit(mlp_forward, static_argnames=("batch_tile",))
    ref = mlp_reference(x, params)

    # 1) bf16 compute (new default), single grid step.
    prep_bf16 = prepare_params(params)  # one-time pad+cast, hoisted out of fwd
    out = jax.block_until_ready(fwd(x, prep_bf16))
    assert out.shape == (B, OUTPUT_DIM)
    assert jnp.allclose(out, ref, atol=5e-2, rtol=5e-2), float(
        jnp.max(jnp.abs(out - ref)))

    # 2) bf16, ragged batch (300 -> padded to 3 grid steps of 128): exercises
    #    the pipelined multi-step grid + batch-only padding path.
    B2 = 300
    x2 = jax.random.normal(k_x2, (B2, INPUT_DIM), jnp.float32)
    out2 = jax.block_until_ready(fwd(x2, prep_bf16, batch_tile=128))
    ref2 = mlp_reference(x2, params)
    assert out2.shape == (B2, OUTPUT_DIM)
    assert jnp.allclose(out2, ref2, atol=5e-2, rtol=5e-2), float(
        jnp.max(jnp.abs(out2 - ref2)))

    # 3) f32 compute: tight-tolerance numerical sanity check.
    prep_f32 = prepare_params(params, compute_dtype=jnp.float32)
    out3 = jax.block_until_ready(fwd(x, prep_f32))
    assert jnp.allclose(out3, ref, atol=1e-4, rtol=1e-4), float(
        jnp.max(jnp.abs(out3 - ref)))

    print("KERNEL_OK")
</pallas_src>

<mosaic_0001>
module attributes {stable_mosaic.version = 11 : i64} {
  func.func @mlp_kernel(%arg0: i32, %arg1: memref<16x16xbf16, #tpu.memory_space<vmem>>, %arg2: memref<16x128xbf16, #tpu.memory_space<vmem>>, %arg3: memref<1x128xf32, #tpu.memory_space<vmem>>, %arg4: memref<128x128xbf16, #tpu.memory_space<vmem>>, %arg5: memref<1x128xf32, #tpu.memory_space<vmem>>, %arg6: memref<128x8xbf16, #tpu.memory_space<vmem>>, %arg7: memref<1x8xf32, #tpu.memory_space<vmem>>, %arg8: memref<16x8xf32, #tpu.memory_space<vmem>>) attributes {dimension_semantics = [#tpu.dimension_semantics<arbitrary>], iteration_bounds = array<i64: 1>, scalar_prefetch = 0 : i64, scratch_operands = 0 : i64, tpu.core_type = #tpu.core_type<tc>, window_params = [{transform_indices = @transform_0, window_bounds = array<i64: 16, 16>}, {pipeline_mode = #tpu.pipeline_mode<synchronous>, transform_indices = @transform_1, window_bounds = array<i64: 16, 128>}, {pipeline_mode = #tpu.pipeline_mode<synchronous>, transform_indices = @transform_2, window_bounds = array<i64: 1, 128>}, {pipeline_mode = #tpu.pipeline_mode<synchronous>, transform_indices = @transform_3, window_bounds = array<i64: 128, 128>}, {pipeline_mode = #tpu.pipeline_mode<synchronous>, transform_indices = @transform_4, window_bounds = array<i64: 1, 128>}, {pipeline_mode = #tpu.pipeline_mode<synchronous>, transform_indices = @transform_5, window_bounds = array<i64: 128, 8>}, {pipeline_mode = #tpu.pipeline_mode<synchronous>, transform_indices = @transform_6, window_bounds = array<i64: 1, 8>}, {transform_indices = @transform_7, window_bounds = array<i64: 16, 8>}]} {
    %c0 = arith.constant 0 : index
    %c0_0 = arith.constant 0 : index
    %0 = vector.load %arg1[%c0, %c0_0] : memref<16x16xbf16, #tpu.memory_space<vmem>>, vector<16x16xbf16>
    %c0_1 = arith.constant 0 : index
    %c0_2 = arith.constant 0 : index
    %1 = vector.load %arg2[%c0_1, %c0_2] : memref<16x128xbf16, #tpu.memory_space<vmem>>, vector<16x128xbf16>
    %cst = arith.constant dense<0.000000e+00> : vector<16x128xf32>
    %2 = tpu.matmul %0, %1, %cst {dimension_numbers = #tpu.dot_dimension_numbers<[1], [0], [0], [1], [0, 0, 1, 1], [], []>} : vector<16x16xbf16>, vector<16x128xbf16>, vector<16x128xf32> -> vector<16x128xf32>
    %c0_3 = arith.constant 0 : index
    %c0_4 = arith.constant 0 : index
    %3 = vector.load %arg3[%c0_3, %c0_4] : memref<1x128xf32, #tpu.memory_space<vmem>>, vector<1x128xf32>
    %4 = vector.broadcast %3 : vector<1x128xf32> to vector<16x128xf32>
    %5 = arith.addf %2, %4 : vector<16x128xf32>
    %cst_5 = arith.constant 0.000000e+00 : f32
    %6 = vector.broadcast %cst_5 : f32 to vector<16x128xf32>
    %7 = arith.maximumf %5, %6 : vector<16x128xf32>
    %8 = arith.truncf %7 : vector<16x128xf32> to vector<16x128xbf16>
    %c0_6 = arith.constant 0 : index
    %c0_7 = arith.constant 0 : index
    %9 = vector.load %arg4[%c0_6, %c0_7] : memref<128x128xbf16, #tpu.memory_space<vmem>>, vector<128x128xbf16>
    %cst_8 = arith.constant dense<0.000000e+00> : vector<16x128xf32>
    %10 = tpu.matmul %8, %9, %cst_8 {dimension_numbers = #tpu.dot_dimension_numbers<[1], [0], [0], [1], [0, 0, 1, 1], [], []>} : vector<16x128xbf16>, vector<128x128xbf16>, vector<16x128xf32> -> vector<16x128xf32>
    %c0_9 = arith.constant 0 : index
    %c0_10 = arith.constant 0 : index
    %11 = vector.load %arg5[%c0_9, %c0_10] : memref<1x128xf32, #tpu.memory_space<vmem>>, vector<1x128xf32>
    %12 = vector.broadcast %11 : vector<1x128xf32> to vector<16x128xf32>
    %13 = arith.addf %10, %12 : vector<16x128xf32>
    %cst_11 = arith.constant 0.000000e+00 : f32
    %14 = vector.broadcast %cst_11 : f32 to vector<16x128xf32>
    %15 = arith.maximumf %13, %14 : vector<16x128xf32>
    %16 = arith.truncf %15 : vector<16x128xf32> to vector<16x128xbf16>
    %c0_12 = arith.constant 0 : index
    %c0_13 = arith.constant 0 : index
    %17 = vector.load %arg6[%c0_12, %c0_13] : memref<128x8xbf16, #tpu.memory_space<vmem>>, vector<128x8xbf16>
    %cst_14 = arith.constant dense<0.000000e+00> : vector<16x8xf32>
    %18 = tpu.matmul %16, %17, %cst_14 {dimension_numbers = #tpu.dot_dimension_numbers<[1], [0], [0], [1], [0, 0, 1, 1], [], []>} : vector<16x128xbf16>, vector<128x8xbf16>, vector<16x8xf32> -> vector<16x8xf32>
    %c0_15 = arith.constant 0 : index
    %c0_16 = arith.constant 0 : index
    %19 = vector.load %arg7[%c0_15, %c0_16] : memref<1x8xf32, #tpu.memory_space<vmem>>, vector<1x8xf32>
    %20 = vector.broadcast %19 : vector<1x8xf32> to vector<16x8xf32>
    %21 = arith.addf %18, %20 : vector<16x8xf32>
    %c0_17 = arith.constant 0 : index
    %c0_18 = arith.constant 0 : index
    %22 = vector.load %arg8[%c0_17, %c0_18] : memref<16x8xf32, #tpu.memory_space<vmem>>, vector<16x8xf32>
    tpu.vector_store %arg8[%c0_17, %c0_18], %21 {strides = array<i32>} : memref<16x8xf32, #tpu.memory_space<vmem>>, vector<16x8xf32>,
    return
  }
  func.func @transform_0(%arg0: i32) -> (i32, i32) {
    %c0_i32 = arith.constant 0 : i32
    %c0_i32_0 = arith.constant 0 : i32
    return %arg0, %c0_i32 : i32, i32
  }
  func.func @transform_1(%arg0: i32) -> (i32, i32) {
    %c0_i32 = arith.constant 0 : i32
    %c0_i32_0 = arith.constant 0 : i32
    %c0_i32_1 = arith.constant 0 : i32
    return %c0_i32, %c0_i32_0 : i32, i32
  }
  func.func @transform_2(%arg0: i32) -> (i32, i32) {
    %c0_i32 = arith.constant 0 : i32
    %c0_i32_0 = arith.constant 0 : i32
    %c0_i32_1 = arith.constant 0 : i32
    return %c0_i32, %c0_i32_0 : i32, i32
  }
  func.func @transform_3(%arg0: i32) -> (i32, i32) {
    %c0_i32 = arith.constant 0 : i32
    %c0_i32_0 = arith.constant 0 : i32
    %c0_i32_1 = arith.constant 0 : i32
    return %c0_i32, %c0_i32_0 : i32, i32
  }
  func.func @transform_4(%arg0: i32) -> (i32, i32) {
    %c0_i32 = arith.constant 0 : i32
    %c0_i32_0 = arith.constant 0 : i32
    %c0_i32_1 = arith.constant 0 : i32
    return %c0_i32, %c0_i32_0 : i32, i32
  }
  func.func @transform_5(%arg0: i32) -> (i32, i32) {
    %c0_i32 = arith.constant 0 : i32
    %c0_i32_0 = arith.constant 0 : i32
    %c0_i32_1 = arith.constant 0 : i32
    return %c0_i32, %c0_i32_0 : i32, i32
  }
  func.func @transform_6(%arg0: i32) -> (i32, i32) {
    %c0_i32 = arith.constant 0 : i32
    %c0_i32_0 = arith.constant 0 : i32
    %c0_i32_1 = arith.constant 0 : i32
    return %c0_i32, %c0_i32_0 : i32, i32
  }
  func.func @transform_7(%arg0: i32) -> (i32, i32) {
    %c0_i32 = arith.constant 0 : i32
    %c0_i32_0 = arith.constant 0 : i32
    return %arg0, %c0_i32 : i32, i32
  }
}

</mosaic_0001>

<bundles_post_ra>
// kernel: mlp_forward.1
= control target key start
LH: loop header
LB: loop body
LE: loop exit
PB: predicated region body
PF: predicated region fallthrough
CT: control target
= control target key end

     0   :  { %v439_v0 = vmov 0.0   ;;  %vm440_vm0 = vmmov 0   ;;  %vm49_vm1 = vcmask 130048   ;;  %vm324_vm2 = vcmask 64512   ;;  %s570_s1 = inlined_call_operand.vmem [shape: bf16[16,128], index: 1, kind: input, shape index: {}]   ;;  %s571_s0 = inlined_call_operand.vmem [shape: bf16[16,16], index: 0, kind: input, shape index: {}]   ;;  %s572_s3 = inlined_call_operand.vmem [shape: bf16[128,128], index: 3, kind: input, shape index: {}]   ;;  %s573_s5 = inlined_call_operand.vmem [shape: bf16[128,8], index: 5, kind: input, shape index: {}]   ;;  %s574_s2 = inlined_call_operand.vmem [shape: f32[1,128], index: 2, kind: input, shape index: {}]   ;;  %s575_s4 = inlined_call_operand.vmem [shape: f32[1,128], index: 4, kind: input, shape index: {}]   ;;  %s576_s6 = inlined_call_operand.vmem [shape: f32[1,8], index: 6, kind: input, shape index: {}]   ;;  %s577_s7 = inlined_call_operand.vmem [shape: f32[16,8], index: 7, kind: output, shape index: {}]  }
   0x1   :  { %373 = vmatprep.subr.bf16.mxu0 %v439_v0  ;;  %v421_v1 = vld [vmem:[%s570_s1] sm:$0xff]   ;;  %375 = vmatprep.mubr.msk.bf16.mxu0 %vm440_vm0, %v439_v0  ;;  %v424_v4 = vld [vmem:[%s572_s3 + $0x8] sm:$0xff]   ;;  %v425_v5 = vld [vmem:[%s572_s3 + $0x10] sm:$0xff]  }
   0x2   :  { %v422_v2 = vld [vmem:[%s571_s0] sm:$0xff]   ;;  %379 = vmatprep.subr.bf16.mxu1 %v439_v0  ;;  %395 = vmatprep.mubr.msk.bf16.mxu1 %vm440_vm0, %v439_v0  ;;  %v426_v6 = vld [vmem:[%s572_s3 + $0x18] sm:$0xff]   ;;  %v428_v8 = vld [vmem:[%s572_s3 + $0x28] sm:$0xff]  }
   0x3   :  { %374 = vmatpush3.bf16.msra.mxu0 %v421_v1  ;;  %v423_v3 = vld [vmem:[%s572_s3] sm:$0xff]   ;;  %v429_v9 = vld [vmem:[%s572_s3 + $0x30] sm:$0xff]   ;;  %v430_v10 = vld [vmem:[%s572_s3 + $0x38] sm:$0xff]  }
   0x4   :  { %399 = vmatprep.subr.bf16.mxu0 %v439_v0  ;;  %380 = vmatpush3.bf16.msra.mxu1 %v423_v3  ;;  %v427_v7 = vld [vmem:[%s572_s3 + $0x20] sm:$0xff]   ;;  %v432_v12 = vld [vmem:[%s573_s5 + $0x8] sm:$0xff]   ;;  %v433_v13 = vld [vmem:[%s573_s5 + $0x10] sm:$0xff]  }
   0x5   :  { %381 = vmatprep.subr.bf16.mxu1 %v439_v0  ;;  %v431_v11 = vld [vmem:[%s573_s5] sm:$0xff]   ;;  %v434_v14 = vld [vmem:[%s573_s5 + $0x18] sm:$0xff]   ;;  %v436_v16 = vld [vmem:[%s573_s5 + $0x28] sm:$0xff]  }
   0x6   :  { %376 = vmatmul.mubr.msk.bf16.vlgmr.msra.gmra.mrb[0].mxu0 %vm49_vm1, %v422_v2  ;;  %v435_v15 = vld [vmem:[%s573_s5 + $0x20] sm:$0xff]   ;;  %v437_v27 = vld [vmem:[%s573_s5 + $0x30] sm:$0xff]   ;;  %v438_v28 = vld [vmem:[%s573_s5 + $0x38] sm:$0xff]  }
   0x7   :  { %415 = vmatprep.mubr.msk.bf16.mxu0 %vm440_vm0, %v439_v0  ;;  %400 = vmatpush3.bf16.msra.mxu0 %v431_v11  ;;  %v331_v17 = vld [vmem:[%s574_s2] ss:$0 sm:$0xff] }
   0x8   :  { %382 = vmatpush3.bf16.msra.mxu1 %v424_v4  ;;  %401 = vmatprep.subr.bf16.mxu0 %v439_v0  ;;  %v335_v29 = vld [vmem:[%s575_s4] ss:$0 sm:$0xff] }
   0x9   :  { %383 = vmatprep.subr.bf16.mxu1 %v439_v0  ;;  %v344_v39 = vld [vmem:[%s576_s6] ss:$0 sm:$0xff] }
   0xb   :  { %402 = vmatpush3.bf16.msra.mxu0 %v432_v12 }
   0xc   :  { %384 = vmatpush3.bf16.msra.mxu1 %v425_v5  ;;  %403 = vmatprep.subr.bf16.mxu0 %v439_v0 }
   0xd   :  { %385 = vmatprep.subr.bf16.mxu1 %v439_v0 }
   0xf   :  { %404 = vmatpush3.bf16.msra.mxu0 %v433_v13 }
  0x10   :  { %386 = vmatpush3.bf16.msra.mxu1 %v426_v6  ;;  %405 = vmatprep.subr.bf16.mxu0 %v439_v0 }
  0x11   :  { %387 = vmatprep.subr.bf16.mxu1 %v439_v0 }
  0x13   :  { %406 = vmatpush3.bf16.msra.mxu0 %v434_v14 }
  0x14   :  { %388 = vmatpush3.bf16.msra.mxu1 %v427_v7  ;;  %407 = vmatprep.subr.bf16.mxu0 %v439_v0 }
  0x15   :  { %389 = vmatprep.subr.bf16.mxu1 %v439_v0 }
  0x17   :  { %408 = vmatpush3.bf16.msra.mxu0 %v435_v15 }
  0x18   :  { %390 = vmatpush3.bf16.msra.mxu1 %v428_v8  ;;  %409 = vmatprep.subr.bf16.mxu0 %v439_v0 }
  0x19   :  { %391 = vmatprep.subr.bf16.mxu1 %v439_v0 }
  0x1b   :  { %410 = vmatpush3.bf16.msra.mxu0 %v436_v16 }
  0x1c   :  { %392 = vmatpush3.bf16.msra.mxu1 %v429_v9  ;;  %411 = vmatprep.subr.bf16.mxu0 %v439_v0 }
  0x1d   :  { %393 = vmatprep.subr.bf16.mxu1 %v439_v0 }
  0x1f   :  { %412 = vmatpush3.bf16.msra.mxu0 %v437_v27 }
  0x20   :  { %394 = vmatpush3.bf16.msra.mxu1 %v430_v10  ;;  %413 = vmatprep.subr.bf16.mxu0 %v439_v0 }
  0x23   :  { %414 = vmatpush3.bf16.msra.mxu0 %v438_v28 }
  0xd9   :  { %v87_v18 = vpop.f32.mrb[0].mxu0 }
  0xda   :  { %v88_v19 = vadd.f32 %v331_v17, %v87_v18  ;;  %v377_v20 = vpop.f32.mrb[1].mxu0 }
  0xdb   :  { %v90_v21 = vpop.f32.mrb[2].mxu0 }
  0xdc   :  { %v91_v22 = vadd.f32 %v331_v17, %v90_v21  ;;  %v378_v23 = vpop.f32.mrb[3].mxu0  ;;  %v94_v24 = vmax.f32 %v88_v19, 0.0 }
  0xde   :  { %v95_v25 = vmax.f32 %v91_v22, 0.0 }
  0xe0   :  { %v96_v26 = vpack.c.bf16 %v95_v25, %v94_v24 }
  0xe2   :  { %396 = vmatmul.mubr.bf16.vlgmr.msra.gmra.mrb[0].mxu1 %v96_v26 }
 0x1b5   :  { %v202_v30 = vpop.f32.mrb[0].mxu1 }
 0x1b6   :  { %v203_v31 = vadd.f32 %v335_v29, %v202_v30  ;;  %v397_v32 = vpop.f32.mrb[1].mxu1 }
 0x1b7   :  { %v205_v33 = vpop.f32.mrb[2].mxu1 }
 0x1b8   :  { %v206_v34 = vadd.f32 %v335_v29, %v205_v33  ;;  %v398_v35 = vpop.f32.mrb[3].mxu1  ;;  %v209_v36 = vmax.f32 %v203_v31, 0.0 }
 0x1ba   :  { %v210_v37 = vmax.f32 %v206_v34, 0.0 }
 0x1bc   :  { %v211_v38 = vpack.c.bf16 %v210_v37, %v209_v36 }
 0x1be   :  { %416 = vmatmul.mubr.bf16.vlgmr.msra.gmra.mrb[4].mxu0 %v211_v38 }
 0x291   :  { %v317_v40 = vpop.f32.mrb[4].mxu0 }
 0x292   :  { %v318_v41 = vadd.f32 %v344_v39, %v317_v40  ;;  %v417_v42 = vpop.f32.mrb[5].mxu0 }
 0x293   :  { %v320_v43 = vpop.f32.mrb[6].mxu0 }
 0x294   :  { %325 = vst.msk [vmem:[%s577_s7] sm:$0xff] %vm324_vm2, %v318_v41  ;;  %v321_v44 = vadd.f32 %v344_v39, %v320_v43  ;;  %v418_v45 = vpop.f32.mrb[7].mxu0 }
 0x296   :  { %326 = vst.msk [vmem:[%s577_s7 + $0x8] sm:$0xff] %vm324_vm2, %v321_v44 }

</bundles_post_ra>
